<compile_context>
chip_gen: v7x
topology: tpu7x:2x2x1
jax: 0.10.0
libtpu: 0.0.40
codegen_flags: <defaults>
</compile_context>

<pallas_src>
import jax
import jax.numpy as jnp
from jax.experimental import pallas as pl
from jax.experimental.pallas import tpu as pltpu


def _fusion_kernel(w_ref, t_ref, i_ref, a_ref, o_ref):
    # w_ref: SMEM (3,) f32 pre-scaled fusion weights (denom already folded in).
    w0 = w_ref[0]
    w1 = w_ref[1]
    w2 = w_ref[2]
    o_ref[...] = (w0 * t_ref[...] + w1 * i_ref[...] + w2 * a_ref[...]).astype(
        o_ref.dtype)


def _choose_layout(n_rows, h):
    """Pick a lane-dense 2D layout for the flattened elementwise problem."""
    total = n_rows * h
    if h % 128 == 0:
        return n_rows, h
    # H is not lane friendly: reflatten to (rows, L) with L a multiple of 128
    # if the total element count allows (pure reshape of contiguous data).
    for lane in (1024, 512, 256, 128):
        if total % lane == 0:
            return total // lane, lane
    return n_rows, h  # fall back to (N, H); last block dim == full dim is legal


def _choose_tile_rows(rows, lane, itemsize):
    """VMEM-budgeted row tile: ~1.5 MiB per input block, multiple of 8."""
    block_budget_bytes = 3 * (1 << 19)  # 1.5 MiB/input -> ~12 MiB double-buffered
    if rows <= 8:
        return rows  # block dim equals full array dim (always legal)
    tile = (block_budget_bytes // (lane * itemsize)) // 8 * 8
    tile = max(8, tile)
    tile = min(tile, ((rows + 7) // 8) * 8)
    # Ensure >= 2 grid steps when there is enough work so dimension_semantics
    # ("parallel",) can shard across v7x's 2 TensorCores.
    if tile >= rows and rows >= 16:
        half = (rows + 1) // 2
        tile = max(8, ((half + 7) // 8) * 8)
    return tile


def weighted_fusion(text, image, audio, weights, none_count):
    """text/image/audio: (B, S, H) float32 embeddings. weights: (3,) float32.
    none_count: Python int (how many modalities were None and replaced by 0)."""
    B, S, H = text.shape
    N = B * S
    itemsize = jnp.dtype(text.dtype).itemsize

    # Lane-dense flatten of the elementwise problem (no data movement).
    rows, lane = _choose_layout(N, H)
    t = text.reshape(rows, lane)
    i = image.reshape(rows, lane)
    a = audio.reshape(rows, lane)

    # Fold the denominator (and its >0 guard) plus none_count into the weights.
    # Scalar-only wrapper work; denom <= 0  =>  scale = 0  =>  out == 0.
    denom = jnp.sum(weights) - jnp.float32(none_count)
    scale = jnp.where(denom > 0.0, 1.0 / denom, jnp.float32(0.0))
    w_scaled = (weights * scale).astype(jnp.float32)

    tile_rows = _choose_tile_rows(rows, lane, itemsize)
    grid = (pl.cdiv(rows, tile_rows),)  # ragged last block handled by Pallas

    grid_spec = pltpu.PrefetchScalarGridSpec(
        num_scalar_prefetch=1,  # pre-scaled weights -> SMEM
        grid=grid,
        in_specs=[
            pl.BlockSpec((tile_rows, lane), lambda r, w: (r, 0)),  # text
            pl.BlockSpec((tile_rows, lane), lambda r, w: (r, 0)),  # image
            pl.BlockSpec((tile_rows, lane), lambda r, w: (r, 0)),  # audio
        ],
        out_specs=pl.BlockSpec((tile_rows, lane), lambda r, w: (r, 0)),
    )

    total_elems = rows * lane
    cost = pl.CostEstimate(
        flops=5 * total_elems,                       # 3 mul + 2 add / element
        bytes_accessed=4 * total_elems * itemsize,   # 3 reads + 1 write
        transcendentals=0,
    )

    out = pl.pallas_call(
        _fusion_kernel,
        out_shape=jax.ShapeDtypeStruct((rows, lane), text.dtype),
        grid_spec=grid_spec,
        compiler_params=pltpu.CompilerParams(
            dimension_semantics=("parallel",)),
        cost_estimate=cost,
    )(w_scaled, t, i, a)

    return out.reshape(B, S, H)


def _make_fusion_weights():
    # nn.Parameter(torch.tensor([1.0, 1.0, 1.0])) — deterministic init
    return jnp.array([1.0, 1.0, 1.0], dtype=jnp.float32)


def _reference(text, image, audio, weights, none_count):
    denom = jnp.sum(weights) - jnp.float32(none_count)
    ws = weights[0] * text + weights[1] * image + weights[2] * audio
    return jnp.where(denom > 0.0, ws / denom, jnp.zeros_like(ws))


if __name__ == "__main__":
    key = jax.random.PRNGKey(0)
    kt, ki, ka = jax.random.split(key, 3)

    # --- main case: lane-aligned H, rows split across >=2 grid steps ---
    B, S, H = 2, 8, 128
    text = jax.random.normal(kt, (B, S, H), dtype=jnp.float32)
    image = jax.random.normal(ki, (B, S, H), dtype=jnp.float32)
    audio = jax.random.normal(ka, (B, S, H), dtype=jnp.float32)

    weights = _make_fusion_weights()
    none_count = 0  # all three modalities present

    out = jax.block_until_ready(weighted_fusion(text, image, audio, weights,
                                                none_count))
    ref = _reference(text, image, audio, weights, none_count)
    assert jnp.allclose(out, ref, atol=1e-5, rtol=1e-5), "mismatch vs reference"

    # --- unaligned case: H not a multiple of 128, ragged last grid block ---
    B2, S2, H2 = 3, 7, 96
    k2t, k2i, k2a = jax.random.split(jax.random.PRNGKey(1), 3)
    t2 = jax.random.normal(k2t, (B2, S2, H2), dtype=jnp.float32)
    i2 = jax.random.normal(k2i, (B2, S2, H2), dtype=jnp.float32)
    a2 = jax.random.normal(k2a, (B2, S2, H2), dtype=jnp.float32)
    w2 = jnp.array([0.5, 1.5, 2.0], dtype=jnp.float32)
    out2 = jax.block_until_ready(weighted_fusion(t2, i2, a2, w2, 1))
    ref2 = _reference(t2, i2, a2, w2, 1)
    assert jnp.allclose(out2, ref2, atol=1e-5, rtol=1e-5), "unaligned mismatch"

    # --- denom <= 0 path: output must be exactly zero ---
    out0 = jax.block_until_ready(
        weighted_fusion(text, image, audio,
                        jnp.array([-1.0, -1.0, -1.0], jnp.float32), 0))
    assert jnp.allclose(out0, jnp.zeros_like(out0)), "denom<=0 path mismatch"

    print("KERNEL_OK")
</pallas_src>

<mosaic_0001>
module attributes {stable_mosaic.version = 11 : i64} {
  func.func @_fusion_kernel(%arg0: i32, %arg1: memref<3xf32, #tpu.memory_space<smem>>, %arg2: memref<8x128xf32, #tpu.memory_space<vmem>>, %arg3: memref<8x128xf32, #tpu.memory_space<vmem>>, %arg4: memref<8x128xf32, #tpu.memory_space<vmem>>, %arg5: memref<8x128xf32, #tpu.memory_space<vmem>>) attributes {dimension_semantics = [#tpu.dimension_semantics<parallel>], iteration_bounds = array<i64: 2>, scalar_prefetch = 1 : i64, scratch_operands = 0 : i64, tpu.core_type = #tpu.core_type<tc>, window_params = [{transform_indices = @transform_0, window_bounds = array<i64: 8, 128>}, {transform_indices = @transform_1, window_bounds = array<i64: 8, 128>}, {transform_indices = @transform_2, window_bounds = array<i64: 8, 128>}, {transform_indices = @transform_3, window_bounds = array<i64: 8, 128>}]} {
    %c0 = arith.constant 0 : index
    %0 = memref.load %arg1[%c0] : memref<3xf32, #tpu.memory_space<smem>>
    %c1 = arith.constant 1 : index
    %1 = memref.load %arg1[%c1] : memref<3xf32, #tpu.memory_space<smem>>
    %c2 = arith.constant 2 : index
    %2 = memref.load %arg1[%c2] : memref<3xf32, #tpu.memory_space<smem>>
    %c0_0 = arith.constant 0 : index
    %c0_1 = arith.constant 0 : index
    %3 = vector.load %arg2[%c0_0, %c0_1] : memref<8x128xf32, #tpu.memory_space<vmem>>, vector<8x128xf32>
    %4 = vector.broadcast %0 : f32 to vector<8x128xf32>
    %5 = arith.mulf %4, %3 : vector<8x128xf32>
    %c0_2 = arith.constant 0 : index
    %c0_3 = arith.constant 0 : index
    %6 = vector.load %arg3[%c0_2, %c0_3] : memref<8x128xf32, #tpu.memory_space<vmem>>, vector<8x128xf32>
    %7 = vector.broadcast %1 : f32 to vector<8x128xf32>
    %8 = arith.mulf %7, %6 : vector<8x128xf32>
    %9 = arith.addf %5, %8 : vector<8x128xf32>
    %c0_4 = arith.constant 0 : index
    %c0_5 = arith.constant 0 : index
    %10 = vector.load %arg4[%c0_4, %c0_5] : memref<8x128xf32, #tpu.memory_space<vmem>>, vector<8x128xf32>
    %11 = vector.broadcast %2 : f32 to vector<8x128xf32>
    %12 = arith.mulf %11, %10 : vector<8x128xf32>
    %13 = arith.addf %9, %12 : vector<8x128xf32>
    %c0_6 = arith.constant 0 : index
    %c0_7 = arith.constant 0 : index
    %14 = vector.load %arg5[%c0_6, %c0_7] : memref<8x128xf32, #tpu.memory_space<vmem>>, vector<8x128xf32>
    tpu.vector_store %arg5[%c0_6, %c0_7], %13 {strides = array<i32>} : memref<8x128xf32, #tpu.memory_space<vmem>>, vector<8x128xf32>,
    return
  }
  func.func @transform_0(%arg0: i32, %arg1: memref<3xf32, #tpu.memory_space<smem>>) -> (i32, i32) {
    %c0_i32 = arith.constant 0 : i32
    %c0_i32_0 = arith.constant 0 : i32
    return %arg0, %c0_i32 : i32, i32
  }
  func.func @transform_1(%arg0: i32, %arg1: memref<3xf32, #tpu.memory_space<smem>>) -> (i32, i32) {
    %c0_i32 = arith.constant 0 : i32
    %c0_i32_0 = arith.constant 0 : i32
    return %arg0, %c0_i32 : i32, i32
  }
  func.func @transform_2(%arg0: i32, %arg1: memref<3xf32, #tpu.memory_space<smem>>) -> (i32, i32) {
    %c0_i32 = arith.constant 0 : i32
    %c0_i32_0 = arith.constant 0 : i32
    return %arg0, %c0_i32 : i32, i32
  }
  func.func @transform_3(%arg0: i32, %arg1: memref<3xf32, #tpu.memory_space<smem>>) -> (i32, i32) {
    %c0_i32 = arith.constant 0 : i32
    %c0_i32_0 = arith.constant 0 : i32
    return %arg0, %c0_i32 : i32, i32
  }
}

</mosaic_0001>

<bundles_post_ra>
// kernel: tpu_custom_call.1
= control target key start
LH: loop header
LB: loop body
LE: loop exit
PB: predicated region body
PF: predicated region fallthrough
CT: control target
= control target key end

     0   :  { %s932_s0 = inlined_call_operand.hbm [shape: f32[3], index: 0, kind: input, shape index: {}]   ;;  %s933_s1 = inlined_call_operand.hbm [shape: f32[16,128], index: 1, kind: input, shape index: {}]   ;;  %s934_s2 = inlined_call_operand.hbm [shape: f32[16,128], index: 2, kind: input, shape index: {}]   ;;  %s935_s3 = inlined_call_operand.hbm [shape: f32[16,128], index: 3, kind: input, shape index: {}]   ;;  %s936_s4 = inlined_call_operand.hbm [shape: f32[16,128], index: 4, kind: output, shape index: {}]  }
   0x1   :  { %941 = sst [smem:[#allocation15_spill]] %s934_s2  ;;  %s481_s17 = scalar_lea.hbm %s932_s0, 16 }
   0x2   :  { %p482_p0 = scmp.ne.s32.totalorder %s932_s0, %s481_s17  ;;  %p485_p1 = scmp.lt.u32.totalorder %s481_s17, %s932_s0 }
   0x4   :  { %p487_p2 = pnand %p485_p1, %p482_p0 }
   0x6   :  { %490 = shalt.err (!%p487_p2)  }
   0x7   :  { %s655_s22 = smov [#allocation3]  }
   0x8   :  { %10 = dma.hbm_to_smem %s932_s0, 16, %s655_s22, [#allocation2] }
   0x9   :  { %625 = dma.done.wait [#allocation2], 16 }
   0xa   :  { %626 = vsyncadd [#allocation2], 4294967280 }
   0xb   :  { %12 = sfence }
   0xc   :  { %13 = vsyncpa [#allocation5], 0 }
   0xd   :  { %15 = vsyncpa [#allocation5 + $0x1], 0 }
   0xe   :  { %16 = vsyncpa [#allocation8], 0 }
   0xf   :  { %18 = vsyncpa [#allocation8 + $0x1], 0 }
  0x10   :  { %19 = vsyncpa [#allocation6], 0 }
  0x11   :  { %21 = vsyncpa [#allocation6 + $0x1], 0  ;;  %s697_s25 = smov 0   ;;  %s699_s26 = smov 0  }
  0x12   :  { %s701_s27 = smov 0   ;;  %s703_s28 = smov 0  }
  0x13 LB: > { %s718_s0 = sadd.s32 4294967295, %s653_s28   ;;  %s404_s29 = sadd.s32 4294967294, %s653_s28   ;;  %s653_s28 = sphi %s703_s28, %s960_s28   ;;  %s649_s27 = sphi %s701_s27, %s959_s27   ;;  %s645_s26 = sphi %s699_s26, %s958_s26   ;;  %s641_s25 = sphi %s697_s25, %s957_s25  }
  0x14   : > { %s722_s30 = sadd.s32 1, %s653_s28   ;;  %s34_s5 = sadd.s32 1, %s649_s27 }
  0x15   : > { %s31_s6 = ssub.s32 %s653_s28, %s722_s30  ;;  %p41_p3 = scmp.ne.s32.totalorder %s649_s27, %s645_s26 }
  0x16   : > { %p32_p4 = scmp.eq.s32.totalorder %s31_s6, 0  ;;  %p42_p5 = scmp.eq.s32.totalorder %s653_s28, 0 }
  0x17   : > { %p47_p6 = scmp.ne.s32.totalorder %s645_s26, %s641_s25  ;;  %p48_p7 = scmp.eq.s32.totalorder %s718_s0, 0 }
  0x18   : > { %s734_s7 = scalar_select %p32_p4, %s649_s27, %s34_s5  }
  0x19   : > { %p43_p8 = por %p42_p5, %p41_p3  ;;  %p736_p9 = por %p48_p7, %p47_p6 }
  0x1a   : > { %p123_p10 = scmp.eq.s32.totalorder %s718_s0, 1  ;;  %p129_p11 = scmp.eq.s32.totalorder %s404_s29, 1 }
  0x1b   : > { %s942_s8 = scalar_select %p736_p9, 1, 0 }
  0x1c   : > { %p446_p13 = scmp.lt.s32.totalorder %s653_s28, 2  ;;  %p743_p0 = por %p123_p10, %p41_p3 }
  0x1d   : > { %p747_p1 = por %p129_p11, %p47_p6  ;;  %s149_s11 = sand.u32 1, %s649_s27  }
  0x1e   : > { %s943_s9 = scalar_select %p743_p0, 1, 0 }
  0x1f   : > { %s944_s10 = scalar_select %p747_p1, 1, 0 }
  0x20   : > { %s753_s12 = sshll.u32 %s653_s28, 7  ;;  %s757_s13 = sshll.u32 %s149_s11, 3 }
  0x21   : > { %p759_p2 = pnand %p446_p13, %p43_p8  ;;  %s167_s15 = sand.u32 1, %s653_s28  }
  0x22   : > { %s946_s2 = sld [smem:[#allocation15_spill]]  ;;  %s171_s19 = scalar_lea.vmem [#allocation7], %s757_s13 }
  0x23   : > { %s945_s14 = scalar_select %p759_p2, 1, 0 }
  0x24   : > { %s178_s20 = sshll.u32 %s171_s19, 4  ;;  %s774_s21 = scalar_lea.sflag [#allocation8], %s167_s15  ;;  %s771_s20 = int_to_ptr.vmem [resolvable:$true] %s178_s20 }
  0x25   : > { %p780_p5 = pneg %p759_p2 }
  0x28   : > { %s768_s18 = scalar_lea.hbm %s946_s2, %s753_s12  ;;  %s496_s5 = scalar_lea.hbm %s946_s2, 256 }
  0x29   : > { %s491_s22 = scalar_lea.hbm %s768_s18, 128  ;;  %p497_p8 = scmp.lt.u32.totalorder %s768_s18, %s946_s2 }
  0x2a   : > { %p492_p4 = scmp.ne.s32.totalorder %s768_s18, %s491_s22  ;;  %p498_p10 = scmp.lt.u32.totalorder %s496_s5, %s491_s22 }
  0x2b   : > { %p500_p13 = scmp.lt.u32.totalorder %s491_s22, %s768_s18 }
  0x2c   : > { %p494_p6 = pnand %p780_p5, %p492_p4  ;;  %p499_p11 = por %p498_p10, %p497_p8 }
  0x2e   : > { %p495_p7 = pneg %p494_p6  ;;  %p501_p12 = por %p500_p13, %p499_p11 }
  0x30   : > { %p502_p3 = pnand %p501_p12, %p495_p7 }
  0x32   : > { %505 = shalt.err (!%p502_p3)
}
  0x33   : > { %s506_s15 = scalar_lea.vmem %s771_s20, 128  ;;  %s656_s17 = smov [#allocation7]  }
  0x34   : > { %p507_p4 = scmp.ne.s32.totalorder %s771_s20, %s506_s15  ;;  %s511_s19 = sshll.u32 %s656_s17, 4  ;;  %s512_s19 = int_to_ptr.vmem [resolvable:$false] %s511_s19 }
  0x35   : > { %s513_s24 = scalar_lea.vmem %s512_s19, 256  ;;  %p514_p0 = scmp.lt.s32.totalorder %s771_s20, %s512_s19 }
  0x36   : > { %p509_p6 = pnand %p507_p4, %p780_p5  ;;  %p515_p9 = scmp.lt.s32.totalorder %s513_s24, %s506_s15 }
  0x38   : > { %p510_p1 = pneg %p509_p6  ;;  %p516_p8 = por %p515_p9, %p514_p0 }
  0x3a   : > { %p517_p10 = pnand %p516_p8, %p510_p1 }
  0x3c   : > { %520 = shalt.err (!%p517_p10)
}
  0x3d   : > { %438 = dma.hbm_to_vmem [thread:$0]  (!%p759_p2), %s768_s18, 128, %s771_s20, %s774_s21  }
  0x3e   : > { %p201_p12 = scmp.lt.s32.totalorder %s653_s28, 3  ;;  %s809_s5 = scalar_lea.hbm %s933_s1, %s753_s12 }
  0x3f   : > { %p948_p9 = scmp.ge.s32.totalorder %s653_s28, 1  ;;  %s153_s16 = scalar_lea.vmem [#allocation4], %s757_s13 }
  0x40   : > { %s160_s15 = sshll.u32 %s153_s16, 4  ;;  %s150_s18 = scalar_lea.sflag [#allocation5], %s149_s11  ;;  %s161_s15 = int_to_ptr.vmem [resolvable:$true] %s160_s15 }
  0x41   : > { %p813_p0 = pnand %p948_p9, %p201_p12  ;;  %s521_s20 = scalar_lea.hbm %s809_s5, 128 }
  0x42   : > { %p522_p1 = scmp.ne.s32.totalorder %s809_s5, %s521_s20  ;;  %s526_s24 = scalar_lea.hbm %s933_s1, 256 }
  0x43   : > { %s949_s6 = scalar_select %p813_p0, 1, 0 }
  0x44   : > { %p524_p3 = pnand %p522_p1, %p780_p5  ;;  %p527_p11 = scmp.lt.u32.totalorder %s809_s5, %s933_s1 }
  0x45   : > { %p528_p13 = scmp.lt.u32.totalorder %s526_s24, %s521_s20  ;;  %p530_p6 = scmp.lt.u32.totalorder %s521_s20, %s809_s5 }
  0x46   : > { %p525_p7 = pneg %p524_p3 }
  0x47   : > { %p529_p4 = por %p528_p13, %p527_p11 }
  0x49   : > { %p531_p8 = por %p530_p6, %p529_p4 }
  0x4b   : > { %p532_p10 = pnand %p531_p8, %p525_p7 }
  0x4d   : > { %535 = shalt.err (!%p532_p10)
}
  0x4e   : > { %s536_s11 = scalar_lea.vmem %s161_s15, 128  ;;  %s657_s16 = smov [#allocation4]  }
  0x4f   : > { %p537_p12 = scmp.ne.s32.totalorder %s161_s15, %s536_s11  ;;  %s541_s2 = sshll.u32 %s657_s16, 4  ;;  %s542_s2 = int_to_ptr.vmem [resolvable:$false] %s541_s2 }
  0x50   : > { %s543_s17 = scalar_lea.vmem %s542_s2, 256  ;;  %p544_p3 = scmp.lt.s32.totalorder %s161_s15, %s542_s2 }
  0x51   : > { %p539_p9 = pnand %p537_p12, %p780_p5  ;;  %p545_p0 = scmp.lt.s32.totalorder %s543_s17, %s536_s11 }
  0x53   : > { %p540_p1 = pneg %p539_p9  ;;  %p546_p2 = por %p545_p0, %p544_p3 }
  0x55   : > { %p547_p11 = pnand %p546_p2, %p540_p1 }
  0x57   : > { %550 = shalt.err (!%p547_p11)
}
  0x58   : > { %p950_p13 = scmp.ne.s32.totalorder %s945_s14, 0  ;;  %s841_s24 = scalar_lea.hbm %s935_s3, %s753_s12 }
  0x59   : > { %s189_s2 = scalar_lea.vmem [#allocation9], %s757_s13  ;;  %s551_s29 = scalar_lea.hbm %s841_s24, 128 }
  0x5a   : > { %435 = dma.hbm_to_vmem [thread:$0]  (!%p950_p13), %s809_s5, 128, %s161_s15, %s150_s18  }
  0x5b   : > { %s196_s22 = sshll.u32 %s189_s2, 4  ;;  %p552_p2 = scmp.ne.s32.totalorder %s841_s24, %s551_s29  ;;  %s197_s22 = int_to_ptr.vmem [resolvable:$true] %s196_s22 }
  0x5c   : > { %s556_s5 = scalar_lea.hbm %s935_s3, 256  ;;  %p557_p4 = scmp.lt.u32.totalorder %s841_s24, %s935_s3 }
  0x5d   : > { %p554_p0 = pnand %p552_p2, %p780_p5  ;;  %p558_p6 = scmp.lt.u32.totalorder %s556_s5, %s551_s29 }
  0x5e   : > { %p560_p10 = scmp.lt.u32.totalorder %s551_s29, %s841_s24 }
  0x5f   : > { %p555_p7 = pneg %p554_p0  ;;  %p559_p8 = por %p558_p6, %p557_p4 }
  0x61   : > { %p561_p12 = por %p560_p10, %p559_p8 }
  0x63   : > { %p562_p9 = pnand %p561_p12, %p555_p7 }
  0x65   : > { %565 = shalt.err (!%p562_p9)
}
  0x66   : > { %s566_s12 = scalar_lea.vmem %s197_s22, 128  ;;  %s658_s13 = smov [#allocation9]  }
  0x67   : > { %p567_p1 = scmp.ne.s32.totalorder %s197_s22, %s566_s12  ;;  %s571_s17 = sshll.u32 %s658_s13, 4  ;;  %s572_s17 = int_to_ptr.vmem [resolvable:$false] %s571_s17 }
  0x68   : > { %s573_s20 = scalar_lea.vmem %s572_s17, 256  ;;  %p574_p2 = scmp.lt.s32.totalorder %s197_s22, %s572_s17 }
  0x69   : > { %p569_p3 = pnand %p567_p1, %p780_p5  ;;  %p575_p0 = scmp.lt.s32.totalorder %s573_s20, %s566_s12 }
  0x6b   : > { %p570_p11 = pneg %p569_p3  ;;  %p576_p13 = por %p575_p0, %p574_p2 }
  0x6d   : > { %p577_p4 = pnand %p576_p13, %p570_p11 }
  0x6f   : > { %580 = shalt.err (!%p577_p4)
}
  0x70   : > { %p951_p6 = scmp.ne.s32.totalorder %s945_s14, 0  ;;  %p952_p7 = scmp.ne.s32.totalorder %s949_s6, 0 }
  0x71   : > { %s865_s23 = sand.u32 (!%p952_p7), 1, %s645_s26   ;;  %p953_p5 = scmp.ne.s32.totalorder (!%p952_p7), %s942_s8, 0 }
  0x72   : > { %441 = dma.hbm_to_vmem [thread:$0]  (!%p951_p6), %s841_s24, 128, %s197_s22, %s774_s21  }
  0x73   : > { %205 = sbr.rel (%p952_p7) target bundleno = 154 (0x9a), region = 32  ;;  %s868_s19 = sshll.u32 (!%p952_p7), %s865_s23, 3 }
  0x74   : > { %s208_s2 = scalar_lea.sflag (!%p952_p7), [#allocation5], %s865_s23  ;;  %s211_s29 = scalar_lea.vmem (!%p952_p7), [#allocation4], %s868_s19 }
  0x7a   : > { %628 = dma.done.wait (%p953_p5), %s208_s2, 128  }
  0x7b   : > { %630 = vsyncadd (%p953_p5), %s208_s2, 4294967168  ;;  %s216_s14 = sand.u32 1, %s718_s0   ;;  %s220_s6 = scalar_lea.vmem [#allocation7], %s868_s19 }
  0x7c   : > { %s217_s21 = scalar_lea.sflag [#allocation8], %s216_s14 }
  0x7d   : > { %632 = dma.done.wait (%p953_p5), %s217_s21, 256  }
  0x7e   : > { %634 = vsyncadd (%p953_p5), %s217_s21, 4294967040  ;;  %s262_s24 = sld [smem:[#allocation3]]  ;;  %s418_s22 = sld [smem:[#allocation3 + $0x1]]  ;;  %v265_v0 = vld [vmem:[%s211_s29] sm:$0xff]  ;;  %v268_v2 = vld [vmem:[%s220_s6] sm:$0xff] }
  0x7f   : > { %s419_s11 = sld [smem:[#allocation3 + $0x2]]  ;;  %s229_s16 = scalar_lea.vmem [#allocation9], %s868_s19 }
  0x80   : > { %v272_v6 = vld [vmem:[%s229_s16] sm:$0xff]  ;;  %s261_s5 = scalar_lea.vmem [#allocation10], %s868_s19  ;;  %s421_s15 = sshll.u32 %s718_s0, 7 }
  0x81   : > { %s291_s8 = sshll.u32 %s261_s5, 4  ;;  %s890_s13 = scalar_lea.hbm %s936_s4, %s421_s15  ;;  %s885_s8 = int_to_ptr.vmem [resolvable:$true] %s291_s8 }
  0x82   : > { %s278_s17 = scalar_lea.sflag [#allocation6], %s865_s23  ;;  %s581_s20 = scalar_lea.vmem %s885_s8, 128 }
  0x83   : > { %p582_p13 = scmp.ne.s32.totalorder %s885_s8, %s581_s20  ;;  %p954_p8 = scmp.ne.s32.totalorder %s943_s9, 0 }
  0x84   : > { %v266_v1 = vstv %s262_s24  ;;  %v269_v3 = vstv %s418_s22  ;;  %s659_s0 = smov [#allocation10]  }
  0x85   : > { %v267_v4 = vmul.f32 %v266_v1, %v265_v0  ;;  %v270_v5 = vmul.f32 %v269_v3, %v268_v2  ;;  %v273_v7 = vstv %s419_s11  ;;  %p583_p10 = pnand %p582_p13, %p954_p8  ;;  %s585_s19 = sshll.u32 %s659_s0, 4  ;;  %s586_s19 = int_to_ptr.vmem [resolvable:$false] %s585_s19 }
  0x86   : > { %v274_v8 = vmul.f32 %v273_v7, %v272_v6  ;;  %s587_s2 = scalar_lea.vmem %s586_s19, 256  ;;  %p588_p9 = scmp.lt.s32.totalorder %s885_s8, %s586_s19 }
  0x87   : > { %v271_v9 = vadd.f32 %v270_v5, %v267_v4  ;;  %p584_p12 = pneg %p583_p10  ;;  %p589_p1 = scmp.lt.s32.totalorder %s587_s2, %s581_s20 }
  0x89   : > { %v275_v10 = vadd.f32 %v274_v8, %v271_v9  ;;  %p590_p3 = por %p589_p1, %p588_p9 }
  0x8b   : > { %276 = vst [vmem:[%s261_s5] sm:$0xff] %v275_v10  ;;  %p591_p11 = pnand %p590_p3, %p584_p12 }
  0x8d   : > { %594 = shalt.err (!%p591_p11)
}
  0x8e   : > { %s595_s23 = scalar_lea.hbm %s890_s13, 128  ;;  %s599_s21 = scalar_lea.hbm %s936_s4, 256 }
  0x8f   : > { %p596_p2 = scmp.ne.s32.totalorder %s890_s13, %s595_s23  ;;  %p600_p6 = scmp.lt.u32.totalorder %s890_s13, %s936_s4 }
  0x90   : > { %p601_p7 = scmp.lt.u32.totalorder %s599_s21, %s595_s23  ;;  %p603_p13 = scmp.lt.u32.totalorder %s595_s23, %s890_s13 }
  0x91   : > { %p597_p0 = pnand %p596_p2, %p954_p8 }
  0x92   : > { %p602_p5 = por %p601_p7, %p600_p6 }
  0x93   : > { %p598_p4 = pneg %p597_p0 }
  0x94   : > { %p604_p10 = por %p603_p13, %p602_p5 }
  0x96   : > { %p605_p12 = pnand %p604_p10, %p598_p4 }
  0x98   : > { %608 = shalt.err (!%p605_p12)
}
  0x99   : > { %430 = dma.vmem_to_hbm [thread:$0]  (%p954_p8), %s885_s8, 128, %s890_s13, %s278_s17  }
  0x9a PF: > { %s303_s22 = sand.u32 1, %s641_s25   ;;  %p955_p9 = scmp.ne.s32.totalorder %s944_s10, 0 }
  0x9b   : > { %p956_p1 = scmp.ge.s32.totalorder %s653_s28, 2  ;;  %s304_s11 = scalar_lea.sflag [#allocation6], %s303_s22 }
  0x9d   : > { %p443_p3 = pnand %p956_p1, %p955_p9 }
  0x9f   : > { %636 = dma.done.wait (!%p443_p3), %s304_s11, 128  }
  0xa0   : > { %638 = vsyncadd (!%p443_p3), %s304_s11, 4294967168  ;;  %p24_p11 = scmp.ge.s32.totalorder %s722_s30, 4   ;;  %s957_s25 = smov %s645_s26 }
  0xa1   : > { %s958_s26 = smov %s649_s27  ;;  %s959_s27 = smov %s734_s7 }
  0xa2   : > { %s960_s28 = smov %s722_s30  ;;  %26 = sbr.rel (!%p24_p11) target bundleno = 19 (0x13), region = 101 }
  0xa9   :  { %309 = vsyncpa [#allocation5], 1 }
  0xaa   :  { %311 = vsyncpa [#allocation5 + $0x1], 1 }
  0xab   :  { %312 = vsyncpa [#allocation8], 1 }
  0xac   :  { %314 = vsyncpa [#allocation8 + $0x1], 1 }
  0xad   :  { %315 = vsyncpa [#allocation6], 1 }
  0xae   :  { %317 = vsyncpa [#allocation6 + $0x1], 1 }

</bundles_post_ra>
